<compile_context>
chip_gen: v7x
topology: tpu7x:2x2x1
jax: 0.10.0
libtpu: 0.0.40
codegen_flags: <defaults>
</compile_context>

<pallas_src>
import math

import jax
import jax.numpy as jnp
from jax import lax
from jax.experimental import pallas as pl
from jax.experimental.pallas import tpu as pltpu  # noqa: F401  (kept per convention)

# Small, module-consistent dims
S, B, E, H, C = 8, 2, 32, 4, 16       # seq, batch, embed, heads, num_classes
HD = E // H                           # head dim
BS = S * B                            # batch folded into sublanes (row = s*B + b)
CPAD = 128                            # lane-dense padded class dim

# Packed-constants row layout (all 8-row aligned)
R_WQKV = 0                            # rows  0:32  Wqkv^T (scaled), lanes 0:96
R_WOUT = R_WQKV + E                   # rows 32:64  Wout^T,          lanes 0:32
R_WFC = R_WOUT + E                    # rows 64:96  Wfc^T padded,    lanes 0:128
R_BIAS = R_WFC + E                    # rows 96:104 bias rows
ROWS = R_BIAS + 8                     # 104 total rows (multiple of 8)


def actrec_kernel(x_ref, c_ref, o_ref):
    # x_ref: (BS, E) f32 — whole problem in one tile, row r = s*B + b.
    x = x_ref[...]

    w_qkv = c_ref[R_WQKV:R_WQKV + E, :]          # (E, 128) — lanes 0:3E valid
    b_qkv = c_ref[R_BIAS:R_BIAS + 1, :]          # (1, 128) — lanes 0:3E valid
    b_fc = c_ref[R_BIAS + 1:R_BIAS + 2, :]       # (1, 128) — fused fc bias, -1e30 pad

    # --- fused QKV projection (scale already folded into Q columns / q bias) ---
    qkv = jnp.dot(x, w_qkv, preferred_element_type=jnp.float32) + b_qkv   # (BS, 128)

    # --- block-diagonal additive bias: rows r = s*B + b attend only within b ---
    rb = lax.broadcasted_iota(jnp.int32, (BS, BS), 0) % B
    cb = lax.broadcasted_iota(jnp.int32, (BS, BS), 1) % B
    attn_bias = jnp.where(rb == cb, 0.0, -1e30).astype(jnp.float32)       # (BS, BS)

    dn = (((1,), (1,)), ((), ()))     # contract last dims (q . k^T without .T)

    # --- per-head attention with out_proj folded into the head loop ---
    acc = jnp.zeros((BS, E), jnp.float32)
    for h in range(H):                                   # static unroll, H=4
        qh = qkv[:, h * HD:(h + 1) * HD]                 # (BS, HD)
        kh = qkv[:, E + h * HD:E + (h + 1) * HD]         # (BS, HD)
        vh = qkv[:, 2 * E + h * HD:2 * E + (h + 1) * HD]  # (BS, HD)

        s = lax.dot_general(qh, kh, dn,
                            preferred_element_type=jnp.float32)           # (BS, BS)
        s = s + attn_bias
        s = s - jnp.max(s, axis=-1, keepdims=True)
        p = jnp.exp(s)
        p = p / jnp.sum(p, axis=-1, keepdims=True)       # exact divide (tiny tile)

        attn_h = jnp.dot(p, vh, preferred_element_type=jnp.float32)       # (BS, HD)
        w_out_h = c_ref[R_WOUT + h * HD:R_WOUT + (h + 1) * HD, 0:E]       # (HD, E)
        acc = acc + jnp.dot(attn_h, w_out_h,
                            preferred_element_type=jnp.float32)           # (BS, E)

    # --- classification head (out_proj bias fused into b_fc; -1e30 padding
    #     makes the 112 padded lanes vanish in the softmax) ---
    w_fc = c_ref[R_WFC:R_WFC + E, :]                                      # (E, 128)
    logits = jnp.dot(acc, w_fc, preferred_element_type=jnp.float32) + b_fc
    logits = logits - jnp.max(logits, axis=-1, keepdims=True)
    e = jnp.exp(logits)
    o_ref[...] = e / jnp.sum(e, axis=-1, keepdims=True)  # lane-dense (BS, 128) store


def pack_params(params):
    """One-time (init-time) constant packing: a single (ROWS, 128) f32 buffer."""
    scale = 1.0 / math.sqrt(HD)

    wqkv_t = params["wqkv"].T.astype(jnp.float32)            # (E, 3E)
    wqkv_t = wqkv_t.at[:, :E].multiply(scale)                 # fold score scale into Q
    bqkv = params["bqkv"].reshape(1, 3 * E).astype(jnp.float32)
    bqkv = bqkv.at[:, :E].multiply(scale)

    wout_t = params["wout"].T.astype(jnp.float32)             # (E, E)
    wfc_t = params["wfc"].T.astype(jnp.float32)               # (E, C)
    bout = params["bout"].reshape(1, E).astype(jnp.float32)
    bfc = params["bfc"].reshape(1, C).astype(jnp.float32)

    wfc_pad = jnp.zeros((E, CPAD), jnp.float32).at[:, :C].set(wfc_t)
    bfc_fused = jnp.full((1, CPAD), -1e30, jnp.float32)
    bfc_fused = bfc_fused.at[:, :C].set(bfc + bout @ wfc_t)   # fold out_proj bias

    packed = jnp.zeros((ROWS, CPAD), jnp.float32)
    packed = packed.at[R_WQKV:R_WQKV + E, :3 * E].set(wqkv_t)
    packed = packed.at[R_WOUT:R_WOUT + E, :E].set(wout_t)
    packed = packed.at[R_WFC:R_WFC + E, :].set(wfc_pad)
    packed = packed.at[R_BIAS, :3 * E].set(bqkv[0])
    packed = packed.at[R_BIAS + 1, :].set(bfc_fused[0])
    return packed


@jax.jit
def actrec_forward(x_sbe, packed):
    # (S, B, E) -> (S*B, E) with NO transpose (row r = s*B + b)
    x2 = x_sbe.reshape(BS, E)
    out = pl.pallas_call(
        actrec_kernel,
        out_shape=jax.ShapeDtypeStruct((BS, CPAD), jnp.float32),
    )(x2, packed)
    # drop lane padding, reshape straight back to (S, B, C) — still no transpose
    return out[:, :C].reshape(S, B, C)


def reference_forward(x_sbe, params):
    """Pure-JAX reference (same math) for a correctness check."""
    P = jax.lax.Precision.HIGHEST
    x = jnp.transpose(x_sbe, (1, 0, 2)).astype(jnp.float32)          # (B, S, E)
    qkv = jnp.einsum("bse,fe->bsf", x, params["wqkv"], precision=P) + params["bqkv"]
    q, k, v = qkv[..., :E], qkv[..., E:2 * E], qkv[..., 2 * E:]
    qh = q.reshape(B, S, H, HD).transpose(0, 2, 1, 3)
    kh = k.reshape(B, S, H, HD).transpose(0, 2, 1, 3)
    vh = v.reshape(B, S, H, HD).transpose(0, 2, 1, 3)
    sc = jnp.einsum("bhqd,bhkd->bhqk", qh, kh, precision=P) / math.sqrt(HD)
    p = jax.nn.softmax(sc, axis=-1)
    a = jnp.einsum("bhqk,bhkd->bhqd", p, vh,
                   precision=P).transpose(0, 2, 1, 3).reshape(B, S, E)
    mha = jnp.einsum("bse,fe->bsf", a, params["wout"], precision=P) + params["bout"]
    logits = jnp.einsum("bse,ce->bsc", mha, params["wfc"], precision=P) + params["bfc"]
    soft = jax.nn.softmax(logits, axis=-1)
    return jnp.transpose(soft, (1, 0, 2))


def init_params(key):
    ks = jax.random.split(key, 6)
    scale = 0.1
    return {
        "wqkv": scale * jax.random.normal(ks[0], (3 * E, E), jnp.float32),
        "bqkv": scale * jax.random.normal(ks[1], (1, 3 * E), jnp.float32),
        "wout": scale * jax.random.normal(ks[2], (E, E), jnp.float32),
        "bout": scale * jax.random.normal(ks[3], (1, E), jnp.float32),
        "wfc":  scale * jax.random.normal(ks[4], (C, E), jnp.float32),
        "bfc":  scale * jax.random.normal(ks[5], (1, C), jnp.float32),
    }


if __name__ == "__main__":
    key = jax.random.PRNGKey(0)
    k_x, k_p = jax.random.split(key)
    x = jax.random.normal(k_x, (S, B, E), jnp.float32)     # (seq, batch, embed)
    params = init_params(k_p)

    packed = pack_params(params)                            # one-time weight prep
    packed = jax.block_until_ready(packed)

    out = actrec_forward(x, packed)
    out = jax.block_until_ready(out)

    ref = reference_forward(x, params)
    assert out.shape == (S, B, C)
    assert jnp.allclose(out, ref, atol=2e-3, rtol=2e-3), "mismatch vs reference"
    # exact-divide softmax: rows sum to 1 to f32 accuracy
    assert jnp.allclose(jnp.sum(out, axis=-1), 1.0, atol=1e-3)

    print("KERNEL_OK")
</pallas_src>

<mosaic_0001>
module attributes {stable_mosaic.version = 11 : i64} {
  func.func @actrec_kernel(%arg0: memref<16x32xf32, #tpu.memory_space<vmem>>, %arg1: memref<104x128xf32, #tpu.memory_space<vmem>>, %arg2: memref<16x128xf32, #tpu.memory_space<vmem>>) attributes {dimension_semantics = [], scalar_prefetch = 0 : i64, scratch_operands = 0 : i64, tpu.core_type = #tpu.core_type<tc>} {
    %c0 = arith.constant 0 : index
    %c0_0 = arith.constant 0 : index
    %0 = vector.load %arg0[%c0, %c0_0] : memref<16x32xf32, #tpu.memory_space<vmem>>, vector<16x32xf32>
    %c0_1 = arith.constant 0 : index
    %c0_2 = arith.constant 0 : index
    %1 = vector.load %arg1[%c0_1, %c0_2] : memref<104x128xf32, #tpu.memory_space<vmem>>, vector<32x128xf32>
    %c96 = arith.constant 96 : index
    %c0_3 = arith.constant 0 : index
    %2 = vector.load %arg1[%c96, %c0_3] : memref<104x128xf32, #tpu.memory_space<vmem>>, vector<1x128xf32>
    %c97 = arith.constant 97 : index
    %c0_4 = arith.constant 0 : index
    %3 = vector.load %arg1[%c97, %c0_4] : memref<104x128xf32, #tpu.memory_space<vmem>>, vector<1x128xf32>
    %cst = arith.constant dense<0.000000e+00> : vector<16x128xf32>
    %4 = tpu.matmul %0, %1, %cst {dimension_numbers = #tpu.dot_dimension_numbers<[1], [0], [0], [1], [0, 0, 1, 1], [], []>} : vector<16x32xf32>, vector<32x128xf32>, vector<16x128xf32> -> vector<16x128xf32>
    %5 = vector.broadcast %2 : vector<1x128xf32> to vector<16x128xf32>
    %6 = arith.addf %4, %5 : vector<16x128xf32>
    %7 = tpu.iota {dimensions = array<i32: 0>} : vector<16x16xi32>
    %c2_i32 = arith.constant 2 : i32
    %c0_i32 = arith.constant 0 : i32
    %8 = arith.cmpi eq, %c2_i32, %c0_i32 : i32
    %c1_i32 = arith.constant 1 : i32
    %9 = arith.select %8, %c1_i32, %c2_i32 : i32
    %10 = vector.broadcast %9 : i32 to vector<16x16xi32>
    %11 = arith.remsi %7, %10 : vector<16x16xi32>
    %c0_i32_5 = arith.constant 0 : i32
    %12 = vector.broadcast %c0_i32_5 : i32 to vector<16x16xi32>
    %13 = arith.cmpi ne, %11, %12 : vector<16x16xi32>
    %c0_i32_6 = arith.constant 0 : i32
    %14 = vector.broadcast %c0_i32_6 : i32 to vector<16x16xi32>
    %15 = arith.cmpi slt, %11, %14 : vector<16x16xi32>
    %c0_i32_7 = arith.constant 0 : i32
    %16 = arith.cmpi slt, %9, %c0_i32_7 : i32
    %17 = vector.broadcast %16 : i1 to vector<16x16xi1>
    %18 = vector.broadcast %17 : vector<16x16xi1> to vector<16x16xi1>
    %19 = arith.xori %15, %18 : vector<16x16xi1>
    %20 = arith.andi %19, %13 : vector<16x16xi1>
    %21 = vector.broadcast %9 : i32 to vector<16x16xi32>
    %22 = arith.addi %11, %21 : vector<16x16xi32>
    %23 = arith.select %20, %22, %11 : vector<16x16xi1>, vector<16x16xi32>
    %24 = tpu.iota {dimensions = array<i32: 1>} : vector<16x16xi32>
    %c2_i32_8 = arith.constant 2 : i32
    %c0_i32_9 = arith.constant 0 : i32
    %25 = arith.cmpi eq, %c2_i32_8, %c0_i32_9 : i32
    %c1_i32_10 = arith.constant 1 : i32
    %26 = arith.select %25, %c1_i32_10, %c2_i32_8 : i32
    %27 = vector.broadcast %26 : i32 to vector<16x16xi32>
    %28 = arith.remsi %24, %27 : vector<16x16xi32>
    %c0_i32_11 = arith.constant 0 : i32
    %29 = vector.broadcast %c0_i32_11 : i32 to vector<16x16xi32>
    %30 = arith.cmpi ne, %28, %29 : vector<16x16xi32>
    %c0_i32_12 = arith.constant 0 : i32
    %31 = vector.broadcast %c0_i32_12 : i32 to vector<16x16xi32>
    %32 = arith.cmpi slt, %28, %31 : vector<16x16xi32>
    %c0_i32_13 = arith.constant 0 : i32
    %33 = arith.cmpi slt, %26, %c0_i32_13 : i32
    %34 = vector.broadcast %33 : i1 to vector<16x16xi1>
    %35 = vector.broadcast %34 : vector<16x16xi1> to vector<16x16xi1>
    %36 = arith.xori %32, %35 : vector<16x16xi1>
    %37 = arith.andi %36, %30 : vector<16x16xi1>
    %38 = vector.broadcast %26 : i32 to vector<16x16xi32>
    %39 = arith.addi %28, %38 : vector<16x16xi32>
    %40 = arith.select %37, %39, %28 : vector<16x16xi1>, vector<16x16xi32>
    %41 = arith.cmpi eq, %23, %40 : vector<16x16xi32>
    %cst_14 = arith.constant 0.000000e+00 : f32
    %cst_15 = arith.constant -1.000000e+30 : f32
    %42 = vector.broadcast %cst_14 : f32 to vector<16x16xf32>
    %43 = vector.broadcast %cst_15 : f32 to vector<16x16xf32>
    %44 = arith.select %41, %42, %43 : vector<16x16xi1>, vector<16x16xf32>
    %cst_16 = arith.constant 0.000000e+00 : f32
    %45 = vector.broadcast %cst_16 : f32 to vector<16x32xf32>
    %46 = vector.extract_strided_slice %6 {offsets = [0, 0], sizes = [16, 8], strides = [1, 1]} : vector<16x128xf32> to vector<16x8xf32>
    %47 = vector.extract_strided_slice %6 {offsets = [0, 32], sizes = [16, 8], strides = [1, 1]} : vector<16x128xf32> to vector<16x8xf32>
    %48 = vector.extract_strided_slice %6 {offsets = [0, 64], sizes = [16, 8], strides = [1, 1]} : vector<16x128xf32> to vector<16x8xf32>
    %cst_17 = arith.constant dense<0.000000e+00> : vector<16x16xf32>
    %49 = tpu.matmul %46, %47, %cst_17 {dimension_numbers = #tpu.dot_dimension_numbers<[1], [1], [0], [0], [0, 0, 1, 0], [], []>} : vector<16x8xf32>, vector<16x8xf32>, vector<16x16xf32> -> vector<16x16xf32>
    %50 = arith.addf %49, %44 : vector<16x16xf32>
    %cst_18 = arith.constant dense<0xFF800000> : vector<16xf32>
    %51 = vector.multi_reduction <maximumf>, %50, %cst_18 [1] : vector<16x16xf32> to vector<16xf32>
    %52 = vector.shape_cast %51 : vector<16xf32> to vector<16x1xf32>
    %53 = vector.broadcast %52 : vector<16x1xf32> to vector<16x16xf32>
    %54 = arith.subf %50, %53 : vector<16x16xf32>
    %55 = math.exp %54 : vector<16x16xf32>
    %cst_19 = arith.constant dense<0.000000e+00> : vector<16xf32>
    %56 = vector.multi_reduction <add>, %55, %cst_19 [1] : vector<16x16xf32> to vector<16xf32>
    %57 = vector.shape_cast %56 : vector<16xf32> to vector<16x1xf32>
    %58 = vector.broadcast %57 : vector<16x1xf32> to vector<16x16xf32>
    %59 = arith.divf %55, %58 : vector<16x16xf32>
    %cst_20 = arith.constant dense<0.000000e+00> : vector<16x8xf32>
    %60 = tpu.matmul %59, %48, %cst_20 {dimension_numbers = #tpu.dot_dimension_numbers<[1], [0], [0], [1], [0, 0, 1, 1], [], []>} : vector<16x16xf32>, vector<16x8xf32>, vector<16x8xf32> -> vector<16x8xf32>
    %c32 = arith.constant 32 : index
    %c0_21 = arith.constant 0 : index
    %61 = vector.load %arg1[%c32, %c0_21] : memref<104x128xf32, #tpu.memory_space<vmem>>, vector<8x32xf32>
    %cst_22 = arith.constant dense<0.000000e+00> : vector<16x32xf32>
    %62 = tpu.matmul %60, %61, %cst_22 {dimension_numbers = #tpu.dot_dimension_numbers<[1], [0], [0], [1], [0, 0, 1, 1], [], []>} : vector<16x8xf32>, vector<8x32xf32>, vector<16x32xf32> -> vector<16x32xf32>
    %63 = arith.addf %45, %62 : vector<16x32xf32>
    %64 = vector.extract_strided_slice %6 {offsets = [0, 8], sizes = [16, 8], strides = [1, 1]} : vector<16x128xf32> to vector<16x8xf32>
    %65 = vector.extract_strided_slice %6 {offsets = [0, 40], sizes = [16, 8], strides = [1, 1]} : vector<16x128xf32> to vector<16x8xf32>
    %66 = vector.extract_strided_slice %6 {offsets = [0, 72], sizes = [16, 8], strides = [1, 1]} : vector<16x128xf32> to vector<16x8xf32>
    %cst_23 = arith.constant dense<0.000000e+00> : vector<16x16xf32>
    %67 = tpu.matmul %64, %65, %cst_23 {dimension_numbers = #tpu.dot_dimension_numbers<[1], [1], [0], [0], [0, 0, 1, 0], [], []>} : vector<16x8xf32>, vector<16x8xf32>, vector<16x16xf32> -> vector<16x16xf32>
    %68 = arith.addf %67, %44 : vector<16x16xf32>
    %cst_24 = arith.constant dense<0xFF800000> : vector<16xf32>
    %69 = vector.multi_reduction <maximumf>, %68, %cst_24 [1] : vector<16x16xf32> to vector<16xf32>
    %70 = vector.shape_cast %69 : vector<16xf32> to vector<16x1xf32>
    %71 = vector.broadcast %70 : vector<16x1xf32> to vector<16x16xf32>
    %72 = arith.subf %68, %71 : vector<16x16xf32>
    %73 = math.exp %72 : vector<16x16xf32>
    %cst_25 = arith.constant dense<0.000000e+00> : vector<16xf32>
    %74 = vector.multi_reduction <add>, %73, %cst_25 [1] : vector<16x16xf32> to vector<16xf32>
    %75 = vector.shape_cast %74 : vector<16xf32> to vector<16x1xf32>
    %76 = vector.broadcast %75 : vector<16x1xf32> to vector<16x16xf32>
    %77 = arith.divf %73, %76 : vector<16x16xf32>
    %cst_26 = arith.constant dense<0.000000e+00> : vector<16x8xf32>
    %78 = tpu.matmul %77, %66, %cst_26 {dimension_numbers = #tpu.dot_dimension_numbers<[1], [0], [0], [1], [0, 0, 1, 1], [], []>} : vector<16x16xf32>, vector<16x8xf32>, vector<16x8xf32> -> vector<16x8xf32>
    %c40 = arith.constant 40 : index
    %c0_27 = arith.constant 0 : index
    %79 = vector.load %arg1[%c40, %c0_27] : memref<104x128xf32, #tpu.memory_space<vmem>>, vector<8x32xf32>
    %cst_28 = arith.constant dense<0.000000e+00> : vector<16x32xf32>
    %80 = tpu.matmul %78, %79, %cst_28 {dimension_numbers = #tpu.dot_dimension_numbers<[1], [0], [0], [1], [0, 0, 1, 1], [], []>} : vector<16x8xf32>, vector<8x32xf32>, vector<16x32xf32> -> vector<16x32xf32>
    %81 = arith.addf %63, %80 : vector<16x32xf32>
    %82 = vector.extract_strided_slice %6 {offsets = [0, 16], sizes = [16, 8], strides = [1, 1]} : vector<16x128xf32> to vector<16x8xf32>
    %83 = vector.extract_strided_slice %6 {offsets = [0, 48], sizes = [16, 8], strides = [1, 1]} : vector<16x128xf32> to vector<16x8xf32>
    %84 = vector.extract_strided_slice %6 {offsets = [0, 80], sizes = [16, 8], strides = [1, 1]} : vector<16x128xf32> to vector<16x8xf32>
    %cst_29 = arith.constant dense<0.000000e+00> : vector<16x16xf32>
    %85 = tpu.matmul %82, %83, %cst_29 {dimension_numbers = #tpu.dot_dimension_numbers<[1], [1], [0], [0], [0, 0, 1, 0], [], []>} : vector<16x8xf32>, vector<16x8xf32>, vector<16x16xf32> -> vector<16x16xf32>
    %86 = arith.addf %85, %44 : vector<16x16xf32>
    %cst_30 = arith.constant dense<0xFF800000> : vector<16xf32>
    %87 = vector.multi_reduction <maximumf>, %86, %cst_30 [1] : vector<16x16xf32> to vector<16xf32>
    %88 = vector.shape_cast %87 : vector<16xf32> to vector<16x1xf32>
    %89 = vector.broadcast %88 : vector<16x1xf32> to vector<16x16xf32>
    %90 = arith.subf %86, %89 : vector<16x16xf32>
    %91 = math.exp %90 : vector<16x16xf32>
    %cst_31 = arith.constant dense<0.000000e+00> : vector<16xf32>
    %92 = vector.multi_reduction <add>, %91, %cst_31 [1] : vector<16x16xf32> to vector<16xf32>
    %93 = vector.shape_cast %92 : vector<16xf32> to vector<16x1xf32>
    %94 = vector.broadcast %93 : vector<16x1xf32> to vector<16x16xf32>
    %95 = arith.divf %91, %94 : vector<16x16xf32>
    %cst_32 = arith.constant dense<0.000000e+00> : vector<16x8xf32>
    %96 = tpu.matmul %95, %84, %cst_32 {dimension_numbers = #tpu.dot_dimension_numbers<[1], [0], [0], [1], [0, 0, 1, 1], [], []>} : vector<16x16xf32>, vector<16x8xf32>, vector<16x8xf32> -> vector<16x8xf32>
    %c48 = arith.constant 48 : index
    %c0_33 = arith.constant 0 : index
    %97 = vector.load %arg1[%c48, %c0_33] : memref<104x128xf32, #tpu.memory_space<vmem>>, vector<8x32xf32>
    %cst_34 = arith.constant dense<0.000000e+00> : vector<16x32xf32>
    %98 = tpu.matmul %96, %97, %cst_34 {dimension_numbers = #tpu.dot_dimension_numbers<[1], [0], [0], [1], [0, 0, 1, 1], [], []>} : vector<16x8xf32>, vector<8x32xf32>, vector<16x32xf32> -> vector<16x32xf32>
    %99 = arith.addf %81, %98 : vector<16x32xf32>
    %100 = vector.extract_strided_slice %6 {offsets = [0, 24], sizes = [16, 8], strides = [1, 1]} : vector<16x128xf32> to vector<16x8xf32>
    %101 = vector.extract_strided_slice %6 {offsets = [0, 56], sizes = [16, 8], strides = [1, 1]} : vector<16x128xf32> to vector<16x8xf32>
    %102 = vector.extract_strided_slice %6 {offsets = [0, 88], sizes = [16, 8], strides = [1, 1]} : vector<16x128xf32> to vector<16x8xf32>
    %cst_35 = arith.constant dense<0.000000e+00> : vector<16x16xf32>
    %103 = tpu.matmul %100, %101, %cst_35 {dimension_numbers = #tpu.dot_dimension_numbers<[1], [1], [0], [0], [0, 0, 1, 0], [], []>} : vector<16x8xf32>, vector<16x8xf32>, vector<16x16xf32> -> vector<16x16xf32>
    %104 = arith.addf %103, %44 : vector<16x16xf32>
    %cst_36 = arith.constant dense<0xFF800000> : vector<16xf32>
    %105 = vector.multi_reduction <maximumf>, %104, %cst_36 [1] : vector<16x16xf32> to vector<16xf32>
    %106 = vector.shape_cast %105 : vector<16xf32> to vector<16x1xf32>
    %107 = vector.broadcast %106 : vector<16x1xf32> to vector<16x16xf32>
    %108 = arith.subf %104, %107 : vector<16x16xf32>
    %109 = math.exp %108 : vector<16x16xf32>
    %cst_37 = arith.constant dense<0.000000e+00> : vector<16xf32>
    %110 = vector.multi_reduction <add>, %109, %cst_37 [1] : vector<16x16xf32> to vector<16xf32>
    %111 = vector.shape_cast %110 : vector<16xf32> to vector<16x1xf32>
    %112 = vector.broadcast %111 : vector<16x1xf32> to vector<16x16xf32>
    %113 = arith.divf %109, %112 : vector<16x16xf32>
    %cst_38 = arith.constant dense<0.000000e+00> : vector<16x8xf32>
    %114 = tpu.matmul %113, %102, %cst_38 {dimension_numbers = #tpu.dot_dimension_numbers<[1], [0], [0], [1], [0, 0, 1, 1], [], []>} : vector<16x16xf32>, vector<16x8xf32>, vector<16x8xf32> -> vector<16x8xf32>
    %c56 = arith.constant 56 : index
    %c0_39 = arith.constant 0 : index
    %115 = vector.load %arg1[%c56, %c0_39] : memref<104x128xf32, #tpu.memory_space<vmem>>, vector<8x32xf32>
    %cst_40 = arith.constant dense<0.000000e+00> : vector<16x32xf32>
    %116 = tpu.matmul %114, %115, %cst_40 {dimension_numbers = #tpu.dot_dimension_numbers<[1], [0], [0], [1], [0, 0, 1, 1], [], []>} : vector<16x8xf32>, vector<8x32xf32>, vector<16x32xf32> -> vector<16x32xf32>
    %117 = arith.addf %99, %116 : vector<16x32xf32>
    %c64 = arith.constant 64 : index
    %c0_41 = arith.constant 0 : index
    %118 = vector.load %arg1[%c64, %c0_41] : memref<104x128xf32, #tpu.memory_space<vmem>>, vector<32x128xf32>
    %cst_42 = arith.constant dense<0.000000e+00> : vector<16x128xf32>
    %119 = tpu.matmul %117, %118, %cst_42 {dimension_numbers = #tpu.dot_dimension_numbers<[1], [0], [0], [1], [0, 0, 1, 1], [], []>} : vector<16x32xf32>, vector<32x128xf32>, vector<16x128xf32> -> vector<16x128xf32>
    %120 = vector.broadcast %3 : vector<1x128xf32> to vector<16x128xf32>
    %121 = arith.addf %119, %120 : vector<16x128xf32>
    %cst_43 = arith.constant dense<0xFF800000> : vector<16xf32>
    %122 = vector.multi_reduction <maximumf>, %121, %cst_43 [1] : vector<16x128xf32> to vector<16xf32>
    %123 = vector.shape_cast %122 : vector<16xf32> to vector<16x1xf32>
    %124 = vector.broadcast %123 : vector<16x1xf32> to vector<16x128xf32>
    %125 = arith.subf %121, %124 : vector<16x128xf32>
    %126 = math.exp %125 : vector<16x128xf32>
    %cst_44 = arith.constant dense<0.000000e+00> : vector<16xf32>
    %127 = vector.multi_reduction <add>, %126, %cst_44 [1] : vector<16x128xf32> to vector<16xf32>
    %128 = vector.shape_cast %127 : vector<16xf32> to vector<16x1xf32>
    %129 = vector.broadcast %128 : vector<16x1xf32> to vector<16x128xf32>
    %130 = arith.divf %126, %129 : vector<16x128xf32>
    %c0_45 = arith.constant 0 : index
    %c0_46 = arith.constant 0 : index
    %131 = vector.load %arg2[%c0_45, %c0_46] : memref<16x128xf32, #tpu.memory_space<vmem>>, vector<16x128xf32>
    tpu.vector_store %arg2[%c0_45, %c0_46], %130 {strides = array<i32>} : memref<16x128xf32, #tpu.memory_space<vmem>>, vector<16x128xf32>,
    return
  }
}

</mosaic_0001>

<bundles_post_ra>
// kernel: actrec_forward.1
= control target key start
LH: loop header
LB: loop body
LE: loop exit
PB: predicated region body
PF: predicated region fallthrough
CT: control target
= control target key end

     0   :  { %7 = vsyncpa [#allocation3], 0  ;;  %s2044_s0 = inlined_call_operand.hbm [shape: f32[16,32], index: 0, kind: input, shape index: {}]   ;;  %s2045_s1 = inlined_call_operand.hbm [shape: f32[104,128], index: 1, kind: input, shape index: {}]   ;;  %s2046_s2 = inlined_call_operand.hbm [shape: f32[16,128], index: 2, kind: output, shape index: {}]  }
   0x1   :  { %8 = vsyncpa [#allocation6], 0 }
   0x2   :  { %9 = vsyncpa [#allocation4], 0  ;;  %s1861_s9 = smov [#allocation2]   ;;  %s1789_s13 = scalar_lea.hbm %s2044_s0, 256 }
   0x3   :  { %s15_s10 = sshll.u32 %s1861_s9, 4  ;;  %p1790_p0 = scmp.ne.s32.totalorder %s2044_s0, %s1789_s13  ;;  %s16_s10 = int_to_ptr.vmem [resolvable:$true] %s15_s10 }
   0x4   :  { %p1793_p1 = scmp.lt.u32.totalorder %s1789_s13, %s2044_s0 }
   0x6   :  { %p1795_p2 = pnand %p1793_p1, %p1790_p0 }
   0x8   :  { %1798 = shalt.err (!%p1795_p2)
}
   0x9   :  { %s1799_s18 = scalar_lea.vmem %s16_s10, 256  ;;  %p1804_p4 = scmp.lt.s32.totalorder %s16_s10, %s16_s10 }
   0xa   :  { %p1800_p3 = scmp.ne.s32.totalorder %s16_s10, %s1799_s18  ;;  %p1805_p5 = scmp.lt.s32.totalorder %s1799_s18, %s1799_s18 }
   0xc   :  { %p1806_p6 = por %p1805_p5, %p1804_p4 }
   0xe   :  { %p1807_p7 = pnand %p1806_p6, %p1800_p3 }
  0x10   :  { %1810 = shalt.err (!%p1807_p7)
}
  0x11   :  { %s1862_s19 = smov 128   ;;  %s1863_s20 = smov 8  }
  0x12   :  { %21 = dma.hbm_to_vmem [thread:$0]  %s2044_s0, 256, %s16_s10, [#allocation3], %s1862_s19, %s1862_s19, %s1863_s20  }
  0x13   :  { %s1864_s23 = smov [#allocation5]   ;;  %s1811_s27 = scalar_lea.hbm %s2045_s1, 1664 }
  0x14   :  { %s27_s24 = sshll.u32 %s1864_s23, 4  ;;  %p1812_p8 = scmp.ne.s32.totalorder %s2045_s1, %s1811_s27  ;;  %s28_s24 = int_to_ptr.vmem [resolvable:$true] %s27_s24 }
  0x15   :  { %p1815_p9 = scmp.lt.u32.totalorder %s1811_s27, %s2045_s1 }
  0x17   :  { %p1817_p10 = pnand %p1815_p9, %p1812_p8 }
  0x19   :  { %1820 = shalt.err (!%p1817_p10)
}
  0x1a   :  { %s1821_s4 = scalar_lea.vmem %s28_s24, 1664  ;;  %p1826_p12 = scmp.lt.s32.totalorder %s28_s24, %s28_s24 }
  0x1b   :  { %p1822_p11 = scmp.ne.s32.totalorder %s28_s24, %s1821_s4  ;;  %p1827_p13 = scmp.lt.s32.totalorder %s1821_s4, %s1821_s4 }
  0x1d   :  { %p1828_p0 = por %p1827_p13, %p1826_p12 }
  0x1f   :  { %p1829_p1 = pnand %p1828_p0, %p1822_p11 }
  0x21   :  { %1832 = shalt.err (!%p1829_p1)
}
  0x22   :  { %33 = dma.hbm_to_vmem [thread:$0]  %s2045_s1, 1664, %s28_s24, [#allocation6], %s1862_s19, %s1862_s19, %s1863_s20  }
  0x23   :  { %1855 = dma.done.wait [#allocation3], 256  }
  0x24   :  { %1856 = vsyncadd [#allocation3], 4294967040 }
  0x25   :  { %1857 = dma.done.wait [#allocation6], 1664  }
  0x26   :  { %1858 = vsyncadd [#allocation6], 4294965632  ;;  %vm52_vm0 = vcmask 261120   ;;  %v42_v0 = vld [vmem:[#allocation5] sm:$0xff]  ;;  %v43_v1 = vld [vmem:[#allocation5 + $0x8] sm:$0xff]  ;;  %vm185_vm1 = vcmask 64512   ;;  %v134_v31 = vlaneseq }
  0x27   :  { %v44_v2 = vld [vmem:[#allocation5 + $0x10] sm:$0xff]  ;;  %v1630_v3 = vpack.c.bf16 %v43_v1, %v42_v0  ;;  %v45_v4 = vld [vmem:[#allocation5 + $0x18] sm:$0xff]  ;;  %v1438_v8 = vld [vmem:[#allocation5 + $0x60] ss:$0 sm:$0xff]  ;;  %s1865_s1 = smov 120   ;;  %s1866_s6 = smov 96  }
  0x28   :  { %v40_v5 = vld [vmem:[#allocation2] sm:$0xff]  ;;  %v1634_v6 = vpack.c.bf16 %v45_v4, %v44_v2  ;;  %v41_v7 = vld [vmem:[#allocation2 + $0x8] sm:$0xff]  ;;  %s1867_s7 = smov 88   ;;  %s1868_s8 = smov 112   ;;  %vm1944_vm2 = vmpackc.low %vm185_vm1, %vm185_vm1  ;;  %v135_v32 = vshrl.u32 %v134_v31, 7  ;;  %v162_v34 = vand.u32 127, %v134_v31 }
  0x29   :  { %1540 = vmatprep.mubr.msk.f32.mxu0 %vm52_vm0, %v40_v5  ;;  %1631 = vmatprep.subr.bf16.mxu0 %v1630_v3  ;;  %s1869_s9 = smov 80   ;;  %v1870_v38 = vmov -1e+30   ;;  %vm269_vm5 = vcmask 130048   ;;  %s1871_s10 = smov 56  }
  0x2a   :  { %1633 = vmatpush3.bf16.msra.mxu0 %v1630_v3  ;;  %v136_v33 = vadd.s32 8, %v135_v32  ;;  %v167_v36 = vand.u32 1, %v162_v34  ;;  %v141_v37 = vand.u32 1, %v135_v32  ;;  %s1872_s11 = smov 72   ;;  %s1873_s12 = smov 64  }
  0x2b   :  { %1635 = vmatprep.subr.bf16.mxu0 %v1634_v6  ;;  %s1874_s13 = smov 104   ;;  %s1875_s14 = smov 48  }
  0x2c   :  { %v148_v35 = vand.u32 1, %v136_v33  ;;  %vm175_vm4 = vcmp.eq.s32.totalorder %v141_v37, %v167_v36  ;;  %s1876_s15 = smov 40   ;;  %s1877_s16 = smov [#allocation7]  }
  0x2d   :  { %v1968_v40 = vsel %vm175_vm4, 0.0, %v1870_v38  ;;  %s1425_s17 = sshll.u32 %s1877_s16, 4  ;;  %s1426_s17 = int_to_ptr.vmem [resolvable:$true] %s1425_s17 }
  0x2e   :  { %1637 = vmatpush3.bf16.msra.mxu0 %v1634_v6  ;;  %vm176_vm3 = vcmp.eq.s32.totalorder %v148_v35, %v167_v36  ;;  %s1833_s18 = scalar_lea.vmem %s1426_s17, 256  ;;  %p1838_p3 = scmp.lt.s32.totalorder %s1426_s17, %s1426_s17 }
  0x2f   :  { %v1966_v39 = vsel %vm176_vm3, 0.0, %v1870_v38  ;;  %p1834_p2 = scmp.ne.s32.totalorder %s1426_s17, %s1833_s18  ;;  %p1839_p4 = scmp.lt.s32.totalorder %s1833_s18, %s1833_s18 }
  0x31   :  { %1541 = vmatmul.mubr.msk.f32.vlgmr.msra.gmra.mrb[0].mxu0 %vm52_vm0, %v41_v7  ;;  %p1840_p5 = por %p1839_p4, %p1838_p3 }
  0x33   :  { %p1841_p6 = pnand %p1840_p5, %p1834_p2 }
 0x104   :  { %v1542_v9 = vpop.f32.mrb[0].mxu0 }
 0x105   :  { %v1925_v10 = vadd.f32 %v1542_v9, %v1438_v8  ;;  %v125_v11 = vpop.f32.mrb[1].mxu0 }
 0x106   :  { %v1927_v12 = vadd.f32 %v1438_v8, %v125_v11 }
 0x108   :  { %380 = vrot.lane.b32.xlu1 %v1927_v12, %s1865_s1  ;;  %1547 = vmatprep.mubr.msk.f32.mxu1 %vm185_vm1, %v1927_v12  ;;  %v1934_v13 = vpack.i.bf16 %v1925_v10, %v1927_v12 }
 0x10a   :  { %1710 = vrot.lane.b32.xlu0 %v1934_v13, %s1866_s6 }
 0x10c   :  { %382 = vrot.lane.b32.xlu1 %v1925_v10, %s1865_s1 }
 0x10e   :  { %1715 = vrot.lane.b32.xlu0 %v1934_v13, %s1867_s7 }
 0x110   :  { %743 = vrot.lane.b32.xlu1 %v1927_v12, %s1868_s8 }
 0x112   :  { %1720 = vrot.lane.b32.xlu0 %v1934_v13, %s1869_s9 }
 0x116   :  { %745 = vrot.lane.b32.xlu0 %v1925_v10, %s1868_s8 }
 0x17a   :  { %v381_v24 = vpop.permute.xlu1 %380 }
 0x17c   :  { %v1711_v14 = vpop.permute.xlu0 %1710 }
 0x17d   :  { %v1713_v15 = vunpack.i.h.bf16 %v1711_v14  ;;  %v1712_v16 = vunpack.i.l.bf16 %v1711_v14 }
 0x17e   :  { %v383_v28 = vpop.permute.xlu1 %382 }
 0x17f   :  { %v1638_v18 = vpack.c.bf16 %v1713_v15, %v1712_v16 }
 0x180   :  { %v1716_v19 = vpop.permute.xlu0 %1715 }
 0x181   :  { %v1718_v20 = vunpack.i.h.bf16 %v1716_v19  ;;  %v1717_v21 = vunpack.i.l.bf16 %v1716_v19  ;;  %1640 = vmatprep.subr.msk.bf16.mxu1 %vm1944_vm2, %v1638_v18 }
 0x182   :  { %1643 = vmatpush3.bf16.xpose.msk.msra.mxu1 %vm1944_vm2, %v1638_v18  ;;  %v744_v29 = vpop.permute.xlu1 %743 }
 0x183   :  { %v1648_v22 = vpack.c.bf16 %v1718_v20, %v1717_v21 }
 0x184   :  { %v1721_v23 = vpop.permute.xlu0 %1720 }
 0x185   :  { %v1723_v25 = vunpack.i.h.bf16 %v1721_v23  ;;  %v1722_v26 = vunpack.i.l.bf16 %v1721_v23  ;;  %1650 = vmatprep.subr.msk.bf16.mxu1 %vm1944_vm2, %v1648_v22 }
 0x187   :  { %v1658_v27 = vpack.c.bf16 %v1723_v25, %v1722_v26 }
 0x188   :  { %v746_v30 = vpop.permute.xlu0 %745 }
 0x189   :  { %1548 = vmatmul.mubr.msk.f32.vlgmr.msra.gmra.mrb[0].mxu1 %vm185_vm1, %v1925_v10 }
 0x18a   :  { %1653 = vmatpush3.bf16.xpose.msk.msra.mxu1 %vm1944_vm2, %v1648_v22  ;;  %1561 = vmatprep.mubr.msk.f32.mxu1 %vm185_vm1, %v381_v24 }
 0x18b   :  { %1660 = vmatprep.subr.msk.bf16.mxu1 %vm1944_vm2, %v1658_v27 }
 0x191   :  { %1562 = vmatmul.mubr.msk.f32.vlgmr.msra.gmra.mrb[2].mxu1 %vm185_vm1, %v383_v28 }
 0x192   :  { %1663 = vmatpush3.bf16.xpose.msk.msra.mxu1 %vm1944_vm2, %v1658_v27  ;;  %1585 = vmatprep.mubr.msk.f32.mxu1 %vm185_vm1, %v744_v29 }
 0x199   :  { %1586 = vmatmul.mubr.msk.f32.vlgmr.msra.gmra.mrb[4].mxu1 %vm185_vm1, %v746_v30 }
 0x25c   :  { %v1549_v41 = vpop.f32.mrb[0].mxu1 }
 0x25d   :  { %v266_v42 = vadd.f32 %v1549_v41, %v1966_v39  ;;  %v260_v43 = vpop.f32.mrb[1].mxu1 }
 0x25e   :  { %v261_v44 = vadd.f32 %v260_v43, %v1968_v40 }
 0x25f   :  { %v273_v45 = vsel %vm269_vm5, %v266_v42, -inf }
 0x260   :  { %274 = vmax.xlane.f32.xlu0 %v273_v45  ;;  %v270_v46 = vsel %vm269_vm5, %v261_v44, -inf }
 0x261   :  { %271 = vmax.xlane.f32.xlu1 %v270_v46 }
 0x264   :  { %v1563_v47 = vpop.f32.mrb[2].mxu1 }
 0x265   :  { %v468_v48 = vadd.f32 %v1563_v47, %v1966_v39  ;;  %v462_v49 = vpop.f32.mrb[3].mxu1 }
 0x266   :  { %v463_v50 = vadd.f32 %v462_v49, %v1968_v40 }
 0x267   :  { %v474_v51 = vsel %vm269_vm5, %v468_v48, -inf }
 0x268   :  { %475 = vmax.xlane.f32.xlu1 %v474_v51  ;;  %v471_v52 = vsel %vm269_vm5, %v463_v50, -inf }
 0x269   :  { %472 = vmax.xlane.f32.xlu0 %v471_v52 }
 0x26c   :  { %v1587_v53 = vpop.f32.mrb[4].mxu1 }
 0x26d   :  { %v825_v54 = vpop.f32.mrb[5].mxu1  ;;  %v831_v15 = vadd.f32 %v1587_v53, %v1966_v39  ;;  %v580_v53 = vld [vmem:[#allocation5 + $0x28] sm:$0xff] }
 0x26e   :  { %v826_v14 = vadd.f32 %v825_v54, %v1968_v40  ;;  %v379_v54 = vld [vmem:[#allocation5 + $0x20] sm:$0xff] }
 0x26f   :  { %v837_v18 = vsel %vm269_vm5, %v831_v15, -inf }
 0x270   :  { %v834_v16 = vsel %vm269_vm5, %v826_v14, -inf }
 0x2ed   :  { %v275_v55 = vpop.xlane.xlu0 %274 }
 0x2ee   :  { %v277_v56 = vsub.f32 %v266_v42, %v275_v55  ;;  %v272_v57 = vpop.xlane.xlu1 %271 }
 0x2ef   :  { %v276_v58 = vsub.f32 %v261_v44, %v272_v57 }
 0x2f0   :  { %v280_v59 = vmul.f32 1.442695, %v277_v56 }
 0x2f1   :  { %v278_v60 = vmul.f32 1.442695, %v276_v58 }
 0x2f2   :  { %1749 = vpow2.f32 %v280_v59 }
 0x2f3   :  { %1751 = vpow2.f32 %v278_v60 }
 0x2f5   :  { %v476_v61 = vpop.xlane.xlu1 %475 }
 0x2f6   :  { %v478_v62 = vsub.f32 %v468_v48, %v476_v61  ;;  %v473_v63 = vpop.xlane.xlu0 %472 }
 0x2f7   :  { %v477_v0 = vsub.f32 %v463_v50, %v473_v63 }
 0x2f8   :  { %v481_v1 = vmul.f32 1.442695, %v478_v62 }
 0x2f9   :  { %v479_v2 = vmul.f32 1.442695, %v477_v0 }
 0x2fa   :  { %1753 = vpow2.f32 %v481_v1 }
 0x2fb   :  { %1755 = vpow2.f32 %v479_v2 }
 0x2fc   :  { %v1750_v3 = vpop.eup %1749 }
 0x2fd   :  { %v1752_v4 = vpop.eup %1751  ;;  %v285_v5 = vsel %vm269_vm5, %v1750_v3, 0.0 }
 0x2fe   :  { %286 = vadd.xlane.f32.xlu1 %v285_v5  ;;  %v282_v6 = vsel %vm269_vm5, %v1752_v4, 0.0 }
 0x2ff   :  { %283 = vadd.xlane.f32.xlu0 %v282_v6 }
 0x304   :  { %v1980_v7 = vpop.eup %1753 }
 0x305   :  { %v1756_v8 = vpop.eup %1755  ;;  %v486_v9 = vsel %vm269_vm5, %v1980_v7, 0.0 }
 0x306   :  { %487 = vadd.xlane.f32.xlu1 %v486_v9  ;;  %v483_v11 = vsel %vm269_vm5, %v1756_v8, 0.0  ;;  %v943_v9 = vld [vmem:[#allocation5 + $0x30] sm:$0xff] }
 0x307   :  { %484 = vadd.xlane.f32.xlu0 %v483_v11 }
 0x317   :  { %1730 = vrot.lane.b32.xlu1 %v1934_v13, %s1871_s10 }
 0x31b   :  { %1735 = vrot.lane.b32.xlu1 %v1934_v13, %s1872_s11 }
 0x31d   :  { %1725 = vrot.lane.b32.xlu0 %v1934_v13, %s1873_s12 }
 0x31f   :  { %1029 = vrot.lane.b32.xlu1 %v1925_v10, %s1874_s13 }
 0x321   :  { %1027 = vrot.lane.b32.xlu0 %v1927_v12, %s1874_s13 }
 0x340   :  { %835 = vmax.xlane.f32.xlu0 %v834_v16 }
 0x343   :  { %838 = vmax.xlane.f32.xlu1 %v837_v18 }
 0x354   :  { %1740 = vrot.lane.b32.xlu1 %v1934_v13, %s1875_s14 }
 0x358   :  { %1745 = vrot.lane.b32.xlu1 %v1934_v13, %s1876_s15 }
 0x38b   :  { %v287_v10 = vpop.xlane.xlu1 %286 }
 0x38c   :  { %v284_v19 = vpop.xlane.xlu0 %283 }
 0x38d   :  { %1757 = vrcp.f32 %v284_v19 }
 0x38e   :  { %1759 = vrcp.f32 %v287_v10 }
 0x393   :  { %v488_v12 = vpop.xlane.xlu1 %487 }
 0x394   :  { %v485_v20 = vpop.xlane.xlu0 %484 }
 0x395   :  { %1761 = vrcp.f32 %v485_v20 }
 0x396   :  { %1763 = vrcp.f32 %v488_v12 }
 0x397   :  { %v1758_v21 = vpop.eup %1757  ;;  %v1731_v22 = vpop.permute.xlu1 %1730 }
 0x398   :  { %v1726_v23 = vpop.permute.xlu0 %1725  ;;  %v289_v24 = vmul.f32 %v1758_v21, %v1752_v4  ;;  %v1733_v25 = vunpack.i.h.bf16 %v1731_v22  ;;  %v1732_v26 = vunpack.i.l.bf16 %v1731_v22  ;;  %v1760_v30 = vpop.eup %1759 }
 0x399   :  { %v1728_v27 = vunpack.i.h.bf16 %v1726_v23  ;;  %v1727_v28 = vunpack.i.l.bf16 %v1726_v23  ;;  %v291_v37 = vmul.f32 %v1760_v30, %v1750_v3 }
 0x39a   :  { %1554 = vmatprep.mubr.msk.f32.mxu0 %vm269_vm5, %v289_v24  ;;  %v1654_v34 = vpack.c.bf16 %v1733_v25, %v1732_v26 }
 0x39b   :  { %v1644_v29 = vpack.c.bf16 %v1728_v27, %v1727_v28  ;;  %v1736_v13 = vpop.permute.xlu1 %1735  ;;  %v1227_v28 = vld [vmem:[#allocation5 + $0x38] sm:$0xff] }
 0x39c   :  { %v1738_v31 = vunpack.i.h.bf16 %v1736_v13  ;;  %v1737_v32 = vunpack.i.l.bf16 %v1736_v13  ;;  %v1028_v33 = vpop.permute.xlu0 %1027 }
 0x39d   :  { %1645 = vmatprep.subr.bf16.mxu0 %v1644_v29  ;;  %1604 = vmatprep.mubr.msk.f32.mxu1 %vm185_vm1, %v1028_v33 }
 0x39e   :  { %v1668_v35 = vpack.c.bf16 %v1738_v31, %v1737_v32  ;;  %1647 = vmatpush3.bf16.msra.mxu0 %v1644_v29 }
 0x39f   :  { %v1762_v36 = vpop.eup %1761  ;;  %1655 = vmatprep.subr.bf16.mxu0 %v1654_v34  ;;  %v1030_v43 = vpop.permute.xlu1 %1029 }
 0x3a0   :  { %v1764_v38 = vpop.eup %1763  ;;  %1670 = vmatprep.subr.msk.bf16.mxu1 %vm1944_vm2, %v1668_v35  ;;  %v490_v41 = vmul.f32 %v1762_v36, %v1756_v8  ;;  %v1313_v36 = vld [vmem:[#allocation5 + $0x50] sm:$0xff] }
 0x3a1   :  { %1555 = vmatmul.mubr.msk.f32.vlgmr.msra.gmra.mrb[2].mxu0 %vm269_vm5, %v291_v37  ;;  %1673 = vmatpush3.bf16.xpose.msk.msra.mxu1 %vm1944_vm2, %v1668_v35  ;;  %v492_v42 = vmul.f32 %v1764_v38, %v1980_v7  ;;  %v1312_v35 = vld [vmem:[#allocation5 + $0x48] sm:$0xff]  ;;  %v1314_v38 = vld [vmem:[#allocation5 + $0x58] sm:$0xff] }
 0x3a2   :  { %1657 = vmatpush3.bf16.msra.mxu0 %v1654_v34  ;;  %1568 = vmatprep.mubr.msk.f32.mxu0 %vm269_vm5, %v490_v41  ;;  %v1311_v34 = vld [vmem:[#allocation5 + $0x40] sm:$0xff]  ;;  %v1682_v41 = vpack.c.bf16 %v1314_v38, %v1313_v36 }
 0x3a3   :  { %1571 = vmatprep.subr.mxu0 %v580_v53  ;;  %v1678_v37 = vpack.c.bf16 %v1312_v35, %v1311_v34 }
 0x3a5   :  { %1569 = vmatmul.mubr.msk.f32.vlgmr.msra.gmra.mrb[4].mxu0 %vm269_vm5, %v492_v42  ;;  %1679 = vmatprep.subr.bf16.mxu1 %v1678_v37 }
 0x3a6   :  { %1572 = vmatpush3.msra.mxu0 %v580_v53 }
 0x3a7   :  { %1576 = vmatprep.subr.mxu0 %v379_v54 }
 0x3a8   :  { %1605 = vmatmul.mubr.msk.f32.vlgmr.msra.gmra.mrb[6].mxu1 %vm185_vm1, %v1030_v43 }
 0x3a9   :  { %1681 = vmatpush3.bf16.msra.mxu1 %v1678_v37 }
 0x3aa   :  { %1683 = vmatprep.subr.bf16.mxu1 %v1682_v41 }
 0x3ad   :  { %1685 = vmatpush3.bf16.msra.mxu1 %v1682_v41 }
 0x3cd   :  { %v836_v44 = vpop.xlane.xlu0 %835 }
 0x3ce   :  { %v840_v45 = vsub.f32 %v826_v14, %v836_v44 }
 0x3d0   :  { %v842_v46 = vmul.f32 1.442695, %v840_v45  ;;  %v839_v47 = vpop.xlane.xlu1 %838 }
 0x3d1   :  { %v841_v48 = vsub.f32 %v831_v15, %v839_v47 }
 0x3d2   :  { %1765 = vpow2.f32 %v842_v46  ;;  %v1473_v46 = vld [vmem:[#allocation5 + $0x61] ss:$0 sm:$0xff] }
 0x3d3   :  { %v844_v49 = vmul.f32 1.442695, %v841_v48 }
 0x3d4   :  { %v1741_v56 = vpop.permute.xlu1 %1740 }
 0x3d5   :  { %1767 = vpow2.f32 %v844_v49  ;;  %v1743_v60 = vunpack.i.h.bf16 %v1741_v56  ;;  %v1742_v61 = vunpack.i.l.bf16 %v1741_v56 }
 0x3d7   :  { %v1664_v0 = vpack.c.bf16 %v1743_v60, %v1742_v61 }
 0x3d8   :  { %v1746_v7 = vpop.permute.xlu1 %1745 }
 0x3d9   :  { %v1748_v11 = vunpack.i.h.bf16 %v1746_v7  ;;  %v1747_v14 = vunpack.i.l.bf16 %v1746_v7 }
 0x3dc   :  { %v1766_v17 = vpop.eup %1765 }
 0x3dd   :  { %v846_v50 = vsel %vm269_vm5, %v1766_v17, 0.0 }
 0x3de   :  { %847 = vadd.xlane.f32.xlu0 %v846_v50 }
 0x3df   :  { %v1768_v51 = vpop.eup %1767 }
 0x3e0   :  { %v849_v52 = vsel %vm269_vm5, %v1768_v51, 0.0 }
 0x3e2   :  { %850 = vadd.xlane.f32.xlu0 %v849_v52 }
 0x46b   :  { %v848_v55 = vpop.xlane.xlu0 %847 }
 0x46c   :  { %1769 = vrcp.f32 %v848_v55 }
 0x46f   :  { %v851_v58 = vpop.xlane.xlu0 %850 }
 0x470   :  { %1771 = vrcp.f32 %v851_v58 }
 0x474   :  { %v1556_v57 = vpop.f32.mrb[2].mxu0 }
 0x475   :  { %v370_v59 = vpop.f32.mrb[3].mxu0 }
 0x476   :  { %v1770_v6 = vpop.eup %1769 }
 0x477   :  { %v853_v16 = vmul.f32 %v1770_v6, %v1766_v17 }
 0x478   :  { %v1570_v62 = vpop.f32.mrb[4].mxu0 }
 0x479   :  { %v571_v63 = vpop.f32.mrb[5].mxu0 }
 0x47a   :  { %1573 = vmatprep.mubr.msk.f32.mxu0 %vm185_vm1, %v571_v63  ;;  %v1772_v8 = vpop.eup %1771 }
 0x47b   :  { %1574 = vmatmul.mubr.msk.f32.vlgmr.msra.gmra.mrb[6].mxu0 %vm185_vm1, %v1570_v62  ;;  %v1606_v1 = vpop.f32.mrb[6].mxu1  ;;  %v855_v18 = vmul.f32 %v1772_v8, %v1768_v51 }
 0x47c   :  { %1577 = vmatpush3.msra.mxu0 %v379_v54  ;;  %1578 = vmatprep.mubr.msk.f32.mxu0 %vm185_vm1, %v370_v59  ;;  %v1109_v2 = vpop.f32.mrb[7].mxu1  ;;  %v1115_v4 = vadd.f32 %v1606_v1, %v1966_v39  ;;  %v1674_v39 = vpack.c.bf16 %v1748_v11, %v1747_v14 }
 0x47d   :  { %1665 = vmatprep.subr.bf16.mxu0 %v1664_v0  ;;  %v1110_v3 = vadd.f32 %v1109_v2, %v1968_v40 }
 0x47e   :  { %v1121_v15 = vsel %vm269_vm5, %v1115_v4, -inf }
 0x47f   :  { %v1118_v5 = vsel %vm269_vm5, %v1110_v3, -inf }
 0x480   :  { %1119 = vmax.xlane.f32.xlu0 %v1118_v5 }
 0x483   :  { %1579 = vmatmul.mubr.msk.f32.vlgmr.msra.gmra.mrb[6].mxu0 %vm185_vm1, %v1556_v57 }
 0x484   :  { %1667 = vmatpush3.bf16.msra.mxu0 %v1664_v0  ;;  %1122 = vmax.xlane.f32.xlu0 %v1121_v15 }
 0x485   :  { %1592 = vmatprep.mubr.msk.f32.mxu0 %vm269_vm5, %v853_v16  ;;  %1595 = vmatprep.subr.mxu0 %v943_v9 }
 0x487   :  { %1593 = vmatmul.mubr.msk.f32.vlgmr.msra.gmra.mrb[8].mxu0 %vm269_vm5, %v855_v18 }
 0x488   :  { %1596 = vmatpush3.msra.mxu0 %v943_v9 }
 0x489   :  { %1675 = vmatprep.subr.bf16.mxu0 %v1674_v39 }
 0x50d   :  { %v1120_v40 = vpop.xlane.xlu0 %1119 }
 0x50e   :  { %v1124_v19 = vsub.f32 %v1110_v3, %v1120_v40 }
 0x510   :  { %v1126_v10 = vmul.f32 1.442695, %v1124_v19 }
 0x511   :  { %v1123_v12 = vpop.xlane.xlu0 %1122 }
 0x512   :  { %1773 = vpow2.f32 %v1126_v10  ;;  %v1125_v20 = vsub.f32 %v1115_v4, %v1123_v12 }
 0x514   :  { %v1128_v21 = vmul.f32 1.442695, %v1125_v20 }
 0x516   :  { %1775 = vpow2.f32 %v1128_v21 }
 0x51c   :  { %v1774_v22 = vpop.eup %1773 }
 0x51d   :  { %v1130_v23 = vsel %vm269_vm5, %v1774_v22, 0.0 }
 0x51e   :  { %1131 = vadd.xlane.f32.xlu0 %v1130_v23 }
 0x520   :  { %v1776_v24 = vpop.eup %1775 }
 0x521   :  { %v1133_v25 = vsel %vm269_vm5, %v1776_v24, 0.0 }
 0x522   :  { %1134 = vadd.xlane.f32.xlu0 %v1133_v25 }
 0x55a   :  { %v1594_v26 = vpop.f32.mrb[8].mxu0 }
 0x55b   :  { %v934_v27 = vpop.f32.mrb[9].mxu0 }
 0x55c   :  { %1597 = vmatprep.mubr.msk.f32.mxu0 %vm185_vm1, %v934_v27 }
 0x55d   :  { %1598 = vmatmul.mubr.msk.f32.vlgmr.msra.gmra.mrb[6].mxu0 %vm185_vm1, %v1594_v26 }
 0x55e   :  { %1677 = vmatpush3.bf16.msra.mxu0 %v1674_v39 }
 0x55f   :  { %1614 = vmatprep.subr.mxu0 %v1227_v28 }
 0x5ab   :  { %v1132_v29 = vpop.xlane.xlu0 %1131 }
 0x5ac   :  { %1777 = vrcp.f32 %v1132_v29 }
 0x5af   :  { %v1135_v13 = vpop.xlane.xlu0 %1134 }
 0x5b0   :  { %1779 = vrcp.f32 %v1135_v13 }
 0x5b6   :  { %v1778_v30 = vpop.eup %1777 }
 0x5b7   :  { %v1137_v31 = vmul.f32 %v1778_v30, %v1774_v22 }
 0x5b9   :  { %1611 = vmatprep.mubr.msk.f32.mxu0 %vm269_vm5, %v1137_v31 }
 0x5ba   :  { %v1780_v32 = vpop.eup %1779 }
 0x5bb   :  { %v1139_v33 = vmul.f32 %v1780_v32, %v1776_v24 }
 0x5bd   :  { %1612 = vmatmul.mubr.msk.f32.vlgmr.msra.gmra.mrb[10].mxu0 %vm269_vm5, %v1139_v33 }
 0x5be   :  { %1615 = vmatpush3.msra.mxu0 %v1227_v28 }
 0x690   :  { %v1613_v42 = vpop.f32.mrb[10].mxu0 }
 0x691   :  { %v1218_v43 = vpop.f32.mrb[11].mxu0 }
 0x692   :  { %1616 = vmatprep.mubr.msk.f32.mxu0 %vm185_vm1, %v1218_v43 }
 0x693   :  { %1617 = vmatmul.mubr.msk.f32.vlgmr.msra.gmra.mrb[6].mxu0 %vm185_vm1, %v1613_v42 }
 0x766   :  { %v1618_v44 = vpop.f32.mrb[6].mxu0 }
 0x767   :  { %v1300_v45 = vpop.f32.mrb[7].mxu0 }
 0x768   :  { %1627 = vmatprep.mubr.msk.f32.mxu1 %vm52_vm0, %v1300_v45 }
 0x769   :  { %1628 = vmatmul.mubr.msk.f32.vlgmr.msra.gmra.mrb[8].mxu1 %vm52_vm0, %v1618_v44 }
 0x83c   :  { %v1629_v47 = vpop.f32.mrb[8].mxu1 }
 0x83d   :  { %v1397_v48 = vadd.f32 %v1629_v47, %v1473_v46  ;;  %v1391_v49 = vpop.f32.mrb[9].mxu1 }
 0x83e   :  { %v1392_v17 = vadd.f32 %v1473_v46, %v1391_v49 }
 0x83f   :  { %1402 = vmax.xlane.f32.xlu1 %v1397_v48 }
 0x840   :  { %1400 = vmax.xlane.f32.xlu0 %v1392_v17 }
 0x8cc   :  { %v1403_v50 = vpop.xlane.xlu1 %1402 }
 0x8cd   :  { %v1401_v51 = vpop.xlane.xlu0 %1400  ;;  %v1405_v52 = vsub.f32 %v1397_v48, %v1403_v50 }
 0x8ce   :  { %v1404_v53 = vsub.f32 %v1392_v17, %v1401_v51 }
 0x8cf   :  { %v1408_v55 = vmul.f32 1.442695, %v1405_v52 }
 0x8d0   :  { %v1406_v54 = vmul.f32 1.442695, %v1404_v53 }
 0x8d2   :  { %1781 = vpow2.f32 %v1406_v54 }
 0x8d3   :  { %1783 = vpow2.f32 %v1408_v55 }
 0x8dc   :  { %v1782_v56 = vpop.eup %1781 }
 0x8dd   :  { %1410 = vadd.xlane.f32.xlu0 %v1782_v56  ;;  %v1784_v57 = vpop.eup %1783 }
 0x8e1   :  { %1412 = vadd.xlane.f32.xlu0 %v1784_v57 }
 0x96a   :  { %v1411_v58 = vpop.xlane.xlu0 %1410 }
 0x96b   :  { %1785 = vrcp.f32 %v1411_v58 }
 0x96e   :  { %v1413_v59 = vpop.xlane.xlu0 %1412 }
 0x96f   :  { %1787 = vrcp.f32 %v1413_v59 }
 0x975   :  { %v1786_v60 = vpop.eup %1785 }
 0x976   :  { %v1415_v61 = vmul.f32 %v1786_v60, %v1782_v56 }
 0x978   :  { %1418 = vst [vmem:[#allocation7] sm:$0xff] %v1415_v61 }
 0x979   :  { %v1788_v62 = vpop.eup %1787 }
 0x97a   :  { %v1417_v63 = vmul.f32 %v1788_v62, %v1784_v57 }
 0x97c   :  { %1419 = vst [vmem:[#allocation7 + $0x8] sm:$0xff] %v1417_v63 }
 0x97d   :  { %1844 = shalt.err (!%p1841_p6)
}
 0x97e   :  { %s1845_s23 = scalar_lea.hbm %s2046_s2, 256 }
 0x97f   :  { %p1846_p7 = scmp.ne.s32.totalorder %s2046_s2, %s1845_s23  ;;  %p1849_p8 = scmp.lt.u32.totalorder %s1845_s23, %s2046_s2 }
 0x981   :  { %p1851_p9 = pnand %p1849_p8, %p1846_p7 }
 0x983   :  { %1854 = shalt.err (!%p1851_p9)
}
 0x984   :  { %1431 = dma.vmem_to_hbm [thread:$0]  %s1426_s17, 256, %s2046_s2, [#allocation4], %s1862_s19, %s1862_s19, %s1863_s20  }
 0x985   :  { %1859 = dma.done.wait [#allocation4], 256  }
 0x986   :  { %1860 = vsyncadd [#allocation4], 4294967040 }
 0x987   :  { %1435 = vsyncpa [#allocation3], 1 }
 0x988   :  { %1436 = vsyncpa [#allocation6], 1 }
 0x989   :  { %1437 = vsyncpa [#allocation4], 1 }

</bundles_post_ra>
